<compile_context>
chip_gen: v5e
topology: v5e:2x2
jax: 0.10.0
libtpu: 0.0.40
codegen_flags: <defaults>
</compile_context>

<pallas_src>
import functools

import jax
import jax.numpy as jnp
from jax.experimental import pallas as pl
from jax.experimental.pallas import tpu as pltpu

THRESHOLD = 0.0392   # module defaults (nn.Parameter scalars; baked as static floats here)
FACTOR = 1.2
BN_EPS = 1e-5

_VMEM_IO_BUDGET = 12 << 20     # bytes for double-buffered input+output blocks (fits v5e/v6e/v7x)
_VMEM_LIMIT = 32 << 20         # requested scoped VMEM (<= v7x 64 MiB physical, >= v5e 16 MiB default)
_TARGET_STEP_BYTES = 1 << 20   # aim for >= ~1 MiB of HBM traffic per grid step
_MAX_BATCH_BLOCK = 8           # bound on the statically unrolled per-step batch loop


def _ga_kernel(x_ref, p_ref, o_ref, *, threshold, factor, nb):
    # x_ref: (nb, 3, T) native dtype   p_ref: (C2, 4) f32 = [BN-scale-folded W | bias]
    # o_ref: (nb, C2, T)
    w = p_ref[:, 0:3]            # (C2, 3)
    bias = p_ref[:, 3:4]         # (C2, 1)
    for b in range(nb):          # static unroll, nb <= _MAX_BATCH_BLOCK
        x = x_ref[b].astype(jnp.float32)                  # (3, T) upcast in-kernel
        r = x[0:1, :]
        g = x[1:2, :]
        # mask = (g - r > thr) * factor, zeros -> 1  ==  where(diff > thr, factor, 1)
        m = jnp.where((g - r) > threshold, jnp.float32(factor), jnp.float32(1.0))
        y = x * m                                         # (3, T)
        # 1x1 conv + folded BN: (C2,3)@(3,T) on the MXU, then per-channel bias.
        z = jnp.dot(w, y, preferred_element_type=jnp.float32) + bias   # (C2, T)
        # SiLU with exactly one EUP op per element: sigmoid(z) = 0.5*(tanh(0.5*z)+1)
        s = 0.5 * (jnp.tanh(0.5 * z) + 1.0)
        o_ref[b] = (z * s).astype(o_ref.dtype)


def _plan_blocks(B, C2, HW, in_isz, out_isz):
    """Pick (batch_block nb, lane tile, #lane tiles) from the VMEM budget."""
    per_lane = 3 * in_isz + C2 * out_isz                     # HBM bytes per pixel per batch elem
    max_lanes = max(128, (_VMEM_IO_BUDGET // (2 * per_lane)) // 128 * 128)

    tile_hw = HW if HW <= max_lanes else max_lanes           # full row or 128-multiple tile

    nb = 1
    if tile_hw == HW:
        # Small images: block several batch elements per grid step.
        step_bytes = max(1, HW * per_lane)
        nb = min(B, _MAX_BATCH_BLOCK,
                 max(1, _TARGET_STEP_BYTES // step_bytes),
                 max(1, _VMEM_IO_BUDGET // (2 * step_bytes)))
        while B % nb != 0:                                   # keep exact batch blocks
            nb -= 1

    n_hw = pl.cdiv(HW, tile_hw)

    # v7x megacore: a big single-step grid leaves one TensorCore idle -> split HW.
    if (B // nb) * n_hw < 2 and B * HW * per_lane > (4 << 20):
        nb = 1
        tile_hw = max(128, (((HW + 1) // 2) + 127) // 128 * 128)
        n_hw = pl.cdiv(HW, tile_hw)

    return nb, tile_hw, n_hw


def ga_forward(x_nchw, conv_w, bn_gamma, bn_beta, bn_mean, bn_var,
               *, threshold=THRESHOLD, factor=FACTOR, out_dtype=None):
    """x_nchw: (B, 3, H, W) any float/int dtype. conv_w: (C2, 3, 1, 1). Returns (B, C2, H, W).

    Only the module's default config (k=1, s=1, g=1, d=1, act=SiLU, BN eval mode) is implemented.
    """
    # TODO(synk): general k>1 / stride / groups conv path (module default is k=1, s=1, g=1).
    B, C1, H, W = x_nchw.shape
    assert C1 == 3, "GA forward uses exactly the 3 (R,G,B) input channels"
    C2 = conv_w.shape[0]
    HW = H * W
    out_dtype = x_nchw.dtype if out_dtype is None else out_dtype

    in_isz = jnp.dtype(x_nchw.dtype).itemsize
    out_isz = jnp.dtype(out_dtype).itemsize
    nb, tile_hw, n_hw = _plan_blocks(B, C2, HW, in_isz, out_isz)

    x_flat = x_nchw.reshape(B, 3, HW)     # free reshape, native dtype, no pad / no cast

    # Fold BatchNorm (eval / running stats): scale into weights, bias packed alongside.
    w2d = conv_w.reshape(C2, 3).astype(jnp.float32)
    scale = (bn_gamma.astype(jnp.float32) /
             jnp.sqrt(bn_var.astype(jnp.float32) + BN_EPS))                  # (C2,)
    bias = bn_beta.astype(jnp.float32) - bn_mean.astype(jnp.float32) * scale  # (C2,)
    params = jnp.concatenate([w2d * scale[:, None], bias[:, None]], axis=1)   # (C2, 4)

    kernel = functools.partial(_ga_kernel, threshold=float(threshold),
                               factor=float(factor), nb=nb)

    cost = pl.CostEstimate(
        flops=2 * 3 * C2 * B * HW,
        transcendentals=B * C2 * HW,                      # one tanh per output element
        bytes_accessed=B * HW * (3 * in_isz + C2 * out_isz) + params.size * 4,
    )

    out_flat = pl.pallas_call(
        kernel,
        out_shape=jax.ShapeDtypeStruct((B, C2, HW), out_dtype),
        grid_spec=pltpu.PrefetchScalarGridSpec(
            num_scalar_prefetch=0,
            grid=(B // nb, n_hw),
            in_specs=[
                pl.BlockSpec((nb, 3, tile_hw), lambda ib, it: (ib, 0, it)),
                pl.BlockSpec((C2, 4), lambda ib, it: (0, 0)),   # VMEM-resident constants
            ],
            out_specs=pl.BlockSpec((nb, C2, tile_hw), lambda ib, it: (ib, 0, it)),
        ),
        compiler_params=pltpu.CompilerParams(
            dimension_semantics=("parallel", "parallel"),
            vmem_limit_bytes=_VMEM_LIMIT,
        ),
        cost_estimate=cost,
    )(x_flat, params)

    return out_flat.reshape(B, C2, H, W)


def ga_reference(x_nchw, conv_w, bn_gamma, bn_beta, bn_mean, bn_var,
                 *, threshold=THRESHOLD, factor=FACTOR):
    """Pure-JAX reference mirroring the PyTorch forward (BN in eval mode)."""
    x = x_nchw.astype(jnp.float32)
    r = x[:, 0]
    g = x[:, 1]
    b = x[:, 2]
    m = jnp.where((g - r) > threshold, factor, 1.0).astype(jnp.float32)
    y = jnp.stack([r * m, g * m, b * m], axis=1)                    # (B,3,H,W)
    w2d = conv_w.reshape(conv_w.shape[0], 3).astype(jnp.float32)
    z = jnp.einsum("oc,bchw->bohw", w2d, y)                         # 1x1 conv, no bias
    scale = bn_gamma / jnp.sqrt(bn_var + BN_EPS)
    bias = bn_beta - bn_mean * scale
    z = z * scale[None, :, None, None] + bias[None, :, None, None]
    return z * jax.nn.sigmoid(z)


if __name__ == "__main__":
    key = jax.random.PRNGKey(0)
    k_x, k_w, k_g, k_b, k_m, k_v = jax.random.split(key, 6)

    B, C1, H, W = 2, 3, 16, 16
    C2 = 8

    x = jax.random.normal(k_x, (B, C1, H, W), dtype=jnp.float32) * 0.5
    conv_w = jax.random.normal(k_w, (C2, C1, 1, 1), dtype=jnp.float32) * 0.1
    bn_gamma = 1.0 + 0.1 * jax.random.normal(k_g, (C2,), dtype=jnp.float32)
    bn_beta = 0.1 * jax.random.normal(k_b, (C2,), dtype=jnp.float32)
    bn_mean = 0.05 * jax.random.normal(k_m, (C2,), dtype=jnp.float32)
    bn_var = 1.0 + 0.1 * jax.random.uniform(k_v, (C2,), dtype=jnp.float32)

    out = ga_forward(x, conv_w, bn_gamma, bn_beta, bn_mean, bn_var)
    out = jax.block_until_ready(out)

    ref = ga_reference(x, conv_w, bn_gamma, bn_beta, bn_mean, bn_var)
    assert out.shape == (B, C2, H, W)
    assert jnp.allclose(out, ref, atol=2e-5, rtol=2e-5), "mismatch vs reference"

    print("KERNEL_OK")
</pallas_src>

<mosaic_0001>
module attributes {stable_mosaic.version = 11 : i64} {
  func.func @_ga_kernel(%arg0: i32, %arg1: i32, %arg2: memref<2x3x256xf32, #tpu.memory_space<vmem>>, %arg3: memref<8x4xf32, #tpu.memory_space<vmem>>, %arg4: memref<2x8x256xf32, #tpu.memory_space<vmem>>) attributes {dimension_semantics = [#tpu.dimension_semantics<parallel>, #tpu.dimension_semantics<parallel>], iteration_bounds = array<i64: 1, 1>, scalar_prefetch = 0 : i64, scratch_operands = 0 : i64, tpu.core_type = #tpu.core_type<tc>, window_params = [{transform_indices = @transform_0, window_bounds = array<i64: 2, 3, 256>}, {pipeline_mode = #tpu.pipeline_mode<synchronous>, transform_indices = @transform_1, window_bounds = array<i64: 8, 4>}, {transform_indices = @transform_2, window_bounds = array<i64: 2, 8, 256>}]} {
    %c0 = arith.constant 0 : index
    %c0_0 = arith.constant 0 : index
    %0 = vector.load %arg3[%c0, %c0_0] : memref<8x4xf32, #tpu.memory_space<vmem>>, vector<8x3xf32>
    %c0_1 = arith.constant 0 : index
    %c3 = arith.constant 3 : index
    %1 = vector.load %arg3[%c0_1, %c3] : memref<8x4xf32, #tpu.memory_space<vmem>>, vector<8x1xf32>
    %c0_2 = arith.constant 0 : index
    %c0_3 = arith.constant 0 : index
    %c0_4 = arith.constant 0 : index
    %2 = vector.load %arg2[%c0_2, %c0_3, %c0_4] : memref<2x3x256xf32, #tpu.memory_space<vmem>>, vector<1x3x256xf32>
    %3 = vector.shape_cast %2 : vector<1x3x256xf32> to vector<3x256xf32>
    %4 = vector.extract_strided_slice %3 {offsets = [0, 0], sizes = [1, 256], strides = [1, 1]} : vector<3x256xf32> to vector<1x256xf32>
    %5 = vector.extract_strided_slice %3 {offsets = [1, 0], sizes = [1, 256], strides = [1, 1]} : vector<3x256xf32> to vector<1x256xf32>
    %6 = arith.subf %5, %4 : vector<1x256xf32>
    %cst = arith.constant 3.920000e-02 : f32
    %7 = vector.broadcast %cst : f32 to vector<1x256xf32>
    %8 = arith.cmpf ogt, %6, %7 : vector<1x256xf32>
    %cst_5 = arith.constant 1.200000e+00 : f32
    %cst_6 = arith.constant 1.000000e+00 : f32
    %9 = vector.broadcast %cst_5 : f32 to vector<1x256xf32>
    %10 = vector.broadcast %cst_6 : f32 to vector<1x256xf32>
    %11 = arith.select %8, %9, %10 : vector<1x256xi1>, vector<1x256xf32>
    %12 = vector.broadcast %11 : vector<1x256xf32> to vector<3x256xf32>
    %13 = arith.mulf %3, %12 : vector<3x256xf32>
    %cst_7 = arith.constant dense<0.000000e+00> : vector<8x256xf32>
    %14 = tpu.matmul %0, %13, %cst_7 {dimension_numbers = #tpu.dot_dimension_numbers<[1], [0], [0], [1], [0, 0, 1, 1], [], []>} : vector<8x3xf32>, vector<3x256xf32>, vector<8x256xf32> -> vector<8x256xf32>
    %15 = vector.broadcast %1 : vector<8x1xf32> to vector<8x256xf32>
    %16 = arith.addf %14, %15 : vector<8x256xf32>
    %cst_8 = arith.constant 5.000000e-01 : f32
    %17 = vector.broadcast %cst_8 : f32 to vector<8x256xf32>
    %18 = arith.mulf %17, %16 : vector<8x256xf32>
    %19 = math.tanh %18 : vector<8x256xf32>
    %cst_9 = arith.constant 1.000000e+00 : f32
    %20 = vector.broadcast %cst_9 : f32 to vector<8x256xf32>
    %21 = arith.addf %19, %20 : vector<8x256xf32>
    %cst_10 = arith.constant 5.000000e-01 : f32
    %22 = vector.broadcast %cst_10 : f32 to vector<8x256xf32>
    %23 = arith.mulf %22, %21 : vector<8x256xf32>
    %24 = arith.mulf %16, %23 : vector<8x256xf32>
    %c0_11 = arith.constant 0 : index
    %c0_12 = arith.constant 0 : index
    %c0_13 = arith.constant 0 : index
    %25 = vector.load %arg4[%c0_11, %c0_12, %c0_13] : memref<2x8x256xf32, #tpu.memory_space<vmem>>, vector<1x8x256xf32>
    %26 = vector.shape_cast %25 : vector<1x8x256xf32> to vector<8x256xf32>
    %27 = vector.shape_cast %24 : vector<8x256xf32> to vector<1x8x256xf32>
    tpu.vector_store %arg4[%c0_11, %c0_12, %c0_13], %27 {strides = array<i32>} : memref<2x8x256xf32, #tpu.memory_space<vmem>>, vector<1x8x256xf32>,
    %c1 = arith.constant 1 : index
    %c0_14 = arith.constant 0 : index
    %c0_15 = arith.constant 0 : index
    %28 = vector.load %arg2[%c1, %c0_14, %c0_15] : memref<2x3x256xf32, #tpu.memory_space<vmem>>, vector<1x3x256xf32>
    %29 = vector.shape_cast %28 : vector<1x3x256xf32> to vector<3x256xf32>
    %30 = vector.extract_strided_slice %29 {offsets = [0, 0], sizes = [1, 256], strides = [1, 1]} : vector<3x256xf32> to vector<1x256xf32>
    %31 = vector.extract_strided_slice %29 {offsets = [1, 0], sizes = [1, 256], strides = [1, 1]} : vector<3x256xf32> to vector<1x256xf32>
    %32 = arith.subf %31, %30 : vector<1x256xf32>
    %cst_16 = arith.constant 3.920000e-02 : f32
    %33 = vector.broadcast %cst_16 : f32 to vector<1x256xf32>
    %34 = arith.cmpf ogt, %32, %33 : vector<1x256xf32>
    %cst_17 = arith.constant 1.200000e+00 : f32
    %cst_18 = arith.constant 1.000000e+00 : f32
    %35 = vector.broadcast %cst_17 : f32 to vector<1x256xf32>
    %36 = vector.broadcast %cst_18 : f32 to vector<1x256xf32>
    %37 = arith.select %34, %35, %36 : vector<1x256xi1>, vector<1x256xf32>
    %38 = vector.broadcast %37 : vector<1x256xf32> to vector<3x256xf32>
    %39 = arith.mulf %29, %38 : vector<3x256xf32>
    %cst_19 = arith.constant dense<0.000000e+00> : vector<8x256xf32>
    %40 = tpu.matmul %0, %39, %cst_19 {dimension_numbers = #tpu.dot_dimension_numbers<[1], [0], [0], [1], [0, 0, 1, 1], [], []>} : vector<8x3xf32>, vector<3x256xf32>, vector<8x256xf32> -> vector<8x256xf32>
    %41 = vector.broadcast %1 : vector<8x1xf32> to vector<8x256xf32>
    %42 = arith.addf %40, %41 : vector<8x256xf32>
    %cst_20 = arith.constant 5.000000e-01 : f32
    %43 = vector.broadcast %cst_20 : f32 to vector<8x256xf32>
    %44 = arith.mulf %43, %42 : vector<8x256xf32>
    %45 = math.tanh %44 : vector<8x256xf32>
    %cst_21 = arith.constant 1.000000e+00 : f32
    %46 = vector.broadcast %cst_21 : f32 to vector<8x256xf32>
    %47 = arith.addf %45, %46 : vector<8x256xf32>
    %cst_22 = arith.constant 5.000000e-01 : f32
    %48 = vector.broadcast %cst_22 : f32 to vector<8x256xf32>
    %49 = arith.mulf %48, %47 : vector<8x256xf32>
    %50 = arith.mulf %42, %49 : vector<8x256xf32>
    %c1_23 = arith.constant 1 : index
    %c0_24 = arith.constant 0 : index
    %c0_25 = arith.constant 0 : index
    %51 = vector.load %arg4[%c1_23, %c0_24, %c0_25] : memref<2x8x256xf32, #tpu.memory_space<vmem>>, vector<1x8x256xf32>
    %52 = vector.shape_cast %51 : vector<1x8x256xf32> to vector<8x256xf32>
    %53 = vector.shape_cast %50 : vector<8x256xf32> to vector<1x8x256xf32>
    tpu.vector_store %arg4[%c1_23, %c0_24, %c0_25], %53 {strides = array<i32>} : memref<2x8x256xf32, #tpu.memory_space<vmem>>, vector<1x8x256xf32>,
    return
  }
  func.func @transform_0(%arg0: i32, %arg1: i32) -> (i32, i32, i32) {
    %c0_i32 = arith.constant 0 : i32
    %c0_i32_0 = arith.constant 0 : i32
    return %arg0, %c0_i32, %arg1 : i32, i32, i32
  }
  func.func @transform_1(%arg0: i32, %arg1: i32) -> (i32, i32) {
    %c0_i32 = arith.constant 0 : i32
    %c0_i32_0 = arith.constant 0 : i32
    %c0_i32_1 = arith.constant 0 : i32
    return %c0_i32, %c0_i32_0 : i32, i32
  }
  func.func @transform_2(%arg0: i32, %arg1: i32) -> (i32, i32, i32) {
    %c0_i32 = arith.constant 0 : i32
    %c0_i32_0 = arith.constant 0 : i32
    return %arg0, %c0_i32, %arg1 : i32, i32, i32
  }
}

</mosaic_0001>

<bundles_post_ra>
// kernel: tpu_custom_call.1
= control target key start
LH: loop header
LB: loop body
LE: loop exit
PB: predicated region body
PF: predicated region fallthrough
CT: control target
= control target key end

     0   :  { %v252_v5 = vmov 3   ;;  %s284_s0 = inlined_call_operand.vmem [shape: f32[2,3,256], index: 0, kind: input, shape index: {}]   ;;  %s285_s1 = inlined_call_operand.vmem [shape: f32[8,4], index: 1, kind: input, shape index: {}]   ;;  %s286_s2 = inlined_call_operand.hbm [shape: f32[2,8,256], index: 2, kind: output, shape index: {}]  }
   0x1   :  { %v13_v0 = vld [vmem:[%s284_s0] sm:$0x77]  ;;  %v207_v2 = vld [vmem:[%s284_s0 + $0x8] sm:$0x77]  ;;  %217 = vset.pattern.permute.xlu0 %v252_v5 }
   0x2   :  { %v15_v1 = vrot.slane %v13_v0, 7  ;;  %v106_v3 = vrot.slane %v207_v2, 7  ;;  %v12_v4 = vld [vmem:[%s285_s1] sm:$0xff] }
   0x3   :  { %7 = vsyncpa [#allocation3], 0  ;;  %36 = vperm.xlu0 %217, %v12_v4   ;;  %v253_v8 = vmov 1.0   ;;  %vm30_vm2 = vcmask 1043456   ;;  %vm46_vm3 = vcmask 1042432   ;;  %vm43_vm4 = vcmask 23552  }
   0x4   :  { %v17_v6 = vsub.f32 %v13_v0, %v15_v1  ;;  %v108_v7 = vsub.f32 %v207_v2, %v106_v3  ;;  %s254_s0 = smov [#allocation2]   ;;  %s191_s17 = sshll.u32 %s286_s2, 4  ;;  %s192_s17 = int_to_ptr.hbm [resolvable:$true] %s191_s17 }
   0x5   :  { %s189_s1 = sshll.u32 %s254_s0, 4  ;;  %s255_s18 = smov 256   ;;  %s190_s1 = int_to_ptr.vmem [resolvable:$true] %s189_s1 }
   0x6   :  { %vm18_vm0 = vcmp.gt.f32.partialorder %v17_v6, 0.0392  ;;  %vm109_vm1 = vcmp.gt.f32.partialorder %v108_v7, 0.0392  ;;  %s256_s19 = smov 16  }
   0x7   :  { %v19_v9 = vsel %vm18_vm0, 1.2, %v253_v8  ;;  %v110_v12 = vsel %vm109_vm1, 1.2, %v253_v8 }
   0x8   :  { %v21_v10 = vperm.slane %v19_v9, 1  ;;  %v22_v11 = vperm.slane %v19_v9, 5  ;;  %v113_v13 = vperm.slane %v110_v12, 5  ;;  %v112_v16 = vperm.slane %v110_v12, 1 }
   0xa   :  { %v25_v14 = vperm.slane %v21_v10, 1  ;;  %v26_v15 = vperm.slane %v22_v11, 1  ;;  %v117_v17 = vperm.slane %v113_v13, 1  ;;  %v116_v20 = vperm.slane %v112_v16, 1 }
   0xc   :  { %v29_v18 = vrot.slane %v26_v15, 4  ;;  %v120_v21 = vrot.slane %v117_v17, 4 }
   0xe   :  { %v31_v19 = vsel %vm30_vm2, %v25_v14, %v29_v18  ;;  %v121_v23 = vsel %vm30_vm2, %v116_v20, %v120_v21 }
   0xf   :  { %v33_v22 = vmul.f32 %v31_v19, %v13_v0  ;;  %v123_v24 = vmul.f32 %v207_v2, %v121_v23 }
  0x11   :  { %40 = vst [vmem:[#allocation1] ss:$2 sm:$0xff] %v33_v22 }
  0x18   :  { %v41_v25 = vld.sshfl [vmem:[#allocation1] sm:$0xff pattern:$0x75316420]  ;;  %v42_v26 = vld.sshfl [vmem:[#allocation1 + $0x8] sm:$0xff pattern:$0x75316420] }
  0x19   :  { %203 = vmatpush.msk.msra.mxu0 %vm46_vm3, %v41_v25  ;;  %205 = vmatpush.msk.msra.mxu1 %vm46_vm3, %v42_v26  ;;  %125 = vst [vmem:[#allocation1] ss:$2 sm:$0xff] %v123_v24 }
  0x1a   :  { %204 = vmatmul.msk.f32.vlgmr.msra.gmra.mxu0 %vm43_vm4, %v12_v4  ;;  %206 = vmatmul.msk.f32.vlgmr.msra.gmra.mxu1 %vm43_vm4, %v12_v4 }
  0x20   :  { %v126_v27 = vld.sshfl [vmem:[#allocation1] sm:$0xff pattern:$0x75316420]  ;;  %v127_v28 = vld.sshfl [vmem:[#allocation1 + $0x8] sm:$0xff pattern:$0x75316420] }
  0x21   :  { %208 = vmatpush.msk.msra.mxu2 %vm46_vm3, %v126_v27  ;;  %210 = vmatpush.msk.msra.mxu3 %vm46_vm3, %v127_v28 }
  0x22   :  { %209 = vmatmul.msk.f32.vlgmr.msra.gmra.mxu2 %vm43_vm4, %v12_v4  ;;  %211 = vmatmul.msk.f32.vlgmr.msra.gmra.mxu3 %vm43_vm4, %v12_v4 }
  0x75   :  { %v37_v29 = vpop.permute.xlu0 %36 }
  0x97   :  { %v68_v30 = vpop.f32.mrf.mxu0  ;;  %v88_v31 = vpop.f32.mrf.mxu1 }
  0x98   :  { %v69_v32 = vadd.f32 %v68_v30, %v37_v29  ;;  %v89_v33 = vadd.f32 %v88_v31, %v37_v29 }
  0x9a   :  { %v91_v34 = vmul.f32 0.5, %v69_v32  ;;  %v92_v35 = vmul.f32 0.5, %v89_v33 }
  0x9c   :  { %218 = vtanh.f32 %v91_v34 }
  0x9d   :  { %220 = vtanh.f32 %v92_v35 }
  0xa2   :  { %v219_v36 = vpop.eup %218 }
  0xa3   :  { %v221_v37 = vpop.eup %220  ;;  %v95_v38 = vadd.f32 1.0, %v219_v36 }
  0xa4   :  { %v96_v39 = vadd.f32 1.0, %v221_v37 }
  0xa5   :  { %v97_v40 = vmul.f32 0.5, %v95_v38  ;;  %v149_v41 = vpop.f32.mrf.mxu2  ;;  %v169_v42 = vpop.f32.mrf.mxu3 }
  0xa6   :  { %v98_v43 = vmul.f32 0.5, %v96_v39  ;;  %v150_v44 = vadd.f32 %v149_v41, %v37_v29  ;;  %v170_v45 = vadd.f32 %v169_v42, %v37_v29 }
  0xa7   :  { %v99_v46 = vmul.f32 %v97_v40, %v69_v32 }
  0xa8   :  { %v100_v47 = vmul.f32 %v98_v43, %v89_v33  ;;  %v172_v48 = vmul.f32 0.5, %v150_v44  ;;  %v173_v49 = vmul.f32 0.5, %v170_v45 }
  0xa9   :  { %101 = vst [vmem:[#allocation2] sm:$0xff] %v99_v46 }
  0xaa   :  { %102 = vst [vmem:[#allocation2 + $0x8] sm:$0xff] %v100_v47  ;;  %222 = vtanh.f32 %v172_v48 }
  0xab   :  { %224 = vtanh.f32 %v173_v49 }
  0xb0   :  { %v223_v50 = vpop.eup %222 }
  0xb1   :  { %v225_v51 = vpop.eup %224  ;;  %v176_v52 = vadd.f32 1.0, %v223_v50 }
  0xb2   :  { %v177_v53 = vadd.f32 1.0, %v225_v51 }
  0xb3   :  { %v178_v54 = vmul.f32 0.5, %v176_v52 }
  0xb4   :  { %v179_v55 = vmul.f32 0.5, %v177_v53 }
  0xb5   :  { %v180_v56 = vmul.f32 %v178_v54, %v150_v44 }
  0xb6   :  { %v181_v57 = vmul.f32 %v179_v55, %v170_v45 }
  0xb7   :  { %183 = vst [vmem:[#allocation2 + $0x10] sm:$0xff] %v180_v56 }
  0xb8   :  { %184 = vst [vmem:[#allocation2 + $0x18] sm:$0xff] %v181_v57 }
  0xb9   :  { %197 = dma.vmem_to_hbm [thread:$0]  %s190_s1, 512, %s192_s17, [#allocation3], %s255_s18, %s255_s18, %s256_s19  }
  0xba   :  { %250 = dma.done.wait [#allocation3], 512  }
  0xbb   :  { %251 = vsyncadd [#allocation3], 4294966784 }
  0xbc   :  { %202 = vsyncpa [#allocation3], 1 }

</bundles_post_ra>
